<compile_context>
chip_gen: v7x
topology: tpu7x:2x2x1
jax: 0.10.0
libtpu: 0.0.40
codegen_flags: <defaults>
</compile_context>

<pallas_src>
import functools

import jax
import jax.numpy as jnp
from jax.experimental import pallas as pl
from jax.experimental.pallas import tpu as pltpu


def _projector_kernel(x_ref, w_ref, b_ref, o_ref):
    """One (tm, P_pad) output tile:  o = cast(x_tile) @ W_t + b  (single K step)."""
    x = x_ref[...].astype(w_ref.dtype)          # fold activation cast into the kernel
    acc = jnp.dot(x, w_ref[...], preferred_element_type=jnp.float32)
    o_ref[...] = (acc + b_ref[...]).astype(o_ref.dtype)


def _tpu_vmem_capacity_bytes():
    try:
        info = pltpu.get_tpu_info()
        cap = getattr(info, "vmem_capacity_bytes", None)
        if cap:
            return int(cap)
    except Exception:
        pass
    return 64 * 1024 * 1024                     # conservative fallback (v7x per-TC VMEM)


def _pick_tm(M, H, P_pad, in_bytes, out_bytes, compute_bytes, budget_bytes):
    """Row-tile size: VMEM-budgeted, >=4 grid steps when M allows, multiple of 8."""
    # Resident operands: single-buffered weight panel (Buffered(1)) + f32 bias row.
    resident = H * P_pad * compute_bytes + P_pad * 4
    # Per output row:
    per_row = (2 * H * in_bytes               # x tile, 2 pipeline buffers (native dtype)
               + H * compute_bytes            # in-kernel bf16 cast temp of the x tile
               + 2 * P_pad * 4                # implicit f32 matmul acc + bias-add temp
               + 2 * P_pad * out_bytes)       # output tile, 2 pipeline buffers
    avail = max(budget_bytes - resident, 8 * per_row)
    tm_max = int(max(8, (avail // per_row) // 8 * 8))
    tm_max = min(tm_max, 1024)                # per-step overhead <15% even on v7x at 1024

    if M < 8:
        return int(M)                          # full-extent row tile (tiny shapes only)

    # Prefer >=4 grid steps (2 TCs on v7x + DMA/compute overlap), but keep tiles >=128
    # rows for large M so the ~0.35us/step overhead stays amortized.
    quarter = max(8, (M // 4) // 8 * 8)
    target = max(128, quarter) if M >= 4 * 128 else quarter
    return int(max(8, min(tm_max, target)))


def prepare_projector_params(weight, bias, compute_dtype=jnp.bfloat16):
    """One-time conversion of nn.Linear params (do this at load time, NOT per call).

    weight: [P, H] (PyTorch layout), bias: [P]
    Returns (w_t [H, P_pad] compute_dtype, b [1, P_pad] float32, P).
    P is padded up to a multiple of 128 so output stores are lane-dense (unmasked vst);
    real PaliGemma projection dims (2048/2304/4608) need no padding.
    """
    P, H = weight.shape
    P_pad = max(128, pl.cdiv(P, 128) * 128)
    w_t = weight.T.astype(compute_dtype)                 # [H, P]
    b = bias.astype(jnp.float32).reshape(1, P)
    if P_pad != P:
        w_t = jnp.pad(w_t, ((0, 0), (0, P_pad - P)))
        b = jnp.pad(b, ((0, 0), (0, P_pad - P)))
    return w_t, b, P


@functools.partial(jax.jit, static_argnames=("out_dim", "tm"))
def multimodal_projector(image_features, w_t, b2d, *, out_dim, tm=None):
    """image_features: [B, S, H] (native dtype); w_t: [H, P_pad]; b2d: [1, P_pad] f32."""
    B, S, H = image_features.shape
    Hw, P_pad = w_t.shape
    assert Hw == H, "weight/activation hidden-size mismatch"
    M = B * S

    out_dtype = image_features.dtype
    in_bytes = jnp.dtype(image_features.dtype).itemsize
    out_bytes = jnp.dtype(out_dtype).itemsize
    cbytes = jnp.dtype(w_t.dtype).itemsize

    vmem_cap = _tpu_vmem_capacity_bytes()
    vmem_limit = min(int(0.75 * vmem_cap), 96 * 1024 * 1024)
    budget = int(0.6 * vmem_cap)

    if tm is None:
        tm = _pick_tm(M, H, P_pad, in_bytes, out_bytes, cbytes, budget)

    x2d = image_features.reshape(M, H)                   # no cast here: done in-kernel
    grid = (pl.cdiv(M, tm),)                             # partial last block masked by Pallas

    cost = pl.CostEstimate(
        flops=2 * M * H * P_pad,
        transcendentals=0,
        bytes_accessed=M * H * in_bytes + H * P_pad * cbytes + M * P_pad * out_bytes,
    )

    out2d = pl.pallas_call(
        _projector_kernel,
        out_shape=jax.ShapeDtypeStruct((M, P_pad), out_dtype),
        grid_spec=pltpu.PrefetchScalarGridSpec(
            num_scalar_prefetch=0,
            grid=grid,
            in_specs=[
                # x tile: streamed over M (double-buffered by default).
                pl.BlockSpec((tm, H), lambda i: (i, 0)),
                # weight panel: constant block index -> VMEM-resident, single buffer.
                pl.BlockSpec((H, P_pad), lambda i: (0, 0),
                             pipeline_mode=pl.Buffered(1)),
                # bias: constant, single buffer.
                pl.BlockSpec((1, P_pad), lambda i: (0, 0),
                             pipeline_mode=pl.Buffered(1)),
            ],
            out_specs=pl.BlockSpec((tm, P_pad), lambda i: (i, 0)),
        ),
        compiler_params=pltpu.CompilerParams(
            dimension_semantics=("parallel",),
            vmem_limit_bytes=vmem_limit,
        ),
        cost_estimate=cost,
    )(x2d, w_t, b2d)

    if P_pad != out_dim:
        out2d = out2d[:, :out_dim]                       # only taken for toy, non-128 dims
    return out2d.reshape(B, S, out_dim)


if __name__ == "__main__":
    # Small synthetic config: vision hidden_size=32, projection_dim=64.
    batch = 2
    num_patches = 16          # image tokens
    hidden_size = 32          # config.vision_config.hidden_size
    projection_dim = 64       # config.vision_config.projection_dim

    key = jax.random.PRNGKey(0)
    k_x, k_w, k_b = jax.random.split(key, 3)

    # Deterministic param init (mimics nn.Linear uniform(-1/sqrt(H), 1/sqrt(H))).
    bound = 1.0 / (hidden_size ** 0.5)
    weight = jax.random.uniform(
        k_w, (projection_dim, hidden_size), jnp.float32, -bound, bound
    )  # PyTorch layout [out, in]
    bias = jax.random.uniform(k_b, (projection_dim,), jnp.float32, -bound, bound)

    image_features = jax.random.normal(
        k_x, (batch, num_patches, hidden_size), jnp.float32
    )

    # One-time parameter prep (outside the hot path).
    w_t, b2d, _ = prepare_projector_params(weight, bias)

    out = multimodal_projector(image_features, w_t, b2d, out_dim=projection_dim)
    out = jax.block_until_ready(out)

    # Reference with matched numerics: bf16 operands, f32 accumulate, f32 bias add.
    x_bf = image_features.astype(jnp.bfloat16).astype(jnp.float32)
    w_bf = weight.T.astype(jnp.bfloat16).astype(jnp.float32)
    ref = x_bf @ w_bf + bias

    assert out.shape == (batch, num_patches, projection_dim)
    assert jnp.allclose(out, ref, atol=1e-4, rtol=1e-4), "mismatch vs bf16 reference"
    # Loose sanity check against the pure-f32 module semantics.
    ref_f32 = image_features @ weight.T + bias
    assert jnp.allclose(out, ref_f32, atol=5e-2, rtol=5e-2), "mismatch vs f32 reference"

    print("KERNEL_OK")
</pallas_src>

<mosaic_0001>
module attributes {stable_mosaic.version = 11 : i64} {
  func.func @_projector_kernel(%arg0: i32, %arg1: memref<8x32xf32, #tpu.memory_space<vmem>>, %arg2: memref<32x128xbf16, #tpu.memory_space<vmem>>, %arg3: memref<1x128xf32, #tpu.memory_space<vmem>>, %arg4: memref<8x128xf32, #tpu.memory_space<vmem>>) attributes {dimension_semantics = [#tpu.dimension_semantics<parallel>], iteration_bounds = array<i64: 4>, scalar_prefetch = 0 : i64, scratch_operands = 0 : i64, tpu.core_type = #tpu.core_type<tc>, window_params = [{transform_indices = @transform_0, window_bounds = array<i64: 8, 32>}, {pipeline_mode = #tpu.pipeline_mode<synchronous>, transform_indices = @transform_1, window_bounds = array<i64: 32, 128>}, {pipeline_mode = #tpu.pipeline_mode<synchronous>, transform_indices = @transform_2, window_bounds = array<i64: 1, 128>}, {transform_indices = @transform_3, window_bounds = array<i64: 8, 128>}]} {
    %c0 = arith.constant 0 : index
    %c0_0 = arith.constant 0 : index
    %0 = vector.load %arg1[%c0, %c0_0] : memref<8x32xf32, #tpu.memory_space<vmem>>, vector<8x32xf32>
    %1 = arith.truncf %0 : vector<8x32xf32> to vector<8x32xbf16>
    %c0_1 = arith.constant 0 : index
    %c0_2 = arith.constant 0 : index
    %2 = vector.load %arg2[%c0_1, %c0_2] : memref<32x128xbf16, #tpu.memory_space<vmem>>, vector<32x128xbf16>
    %cst = arith.constant dense<0.000000e+00> : vector<8x128xf32>
    %3 = tpu.matmul %1, %2, %cst {dimension_numbers = #tpu.dot_dimension_numbers<[1], [0], [0], [1], [0, 0, 1, 1], [], []>} : vector<8x32xbf16>, vector<32x128xbf16>, vector<8x128xf32> -> vector<8x128xf32>
    %c0_3 = arith.constant 0 : index
    %c0_4 = arith.constant 0 : index
    %4 = vector.load %arg3[%c0_3, %c0_4] : memref<1x128xf32, #tpu.memory_space<vmem>>, vector<1x128xf32>
    %5 = vector.broadcast %4 : vector<1x128xf32> to vector<8x128xf32>
    %6 = arith.addf %3, %5 : vector<8x128xf32>
    %c0_5 = arith.constant 0 : index
    %c0_6 = arith.constant 0 : index
    %7 = vector.load %arg4[%c0_5, %c0_6] : memref<8x128xf32, #tpu.memory_space<vmem>>, vector<8x128xf32>
    tpu.vector_store %arg4[%c0_5, %c0_6], %6 {strides = array<i32>} : memref<8x128xf32, #tpu.memory_space<vmem>>, vector<8x128xf32>,
    return
  }
  func.func @transform_0(%arg0: i32) -> (i32, i32) {
    %c0_i32 = arith.constant 0 : i32
    %c0_i32_0 = arith.constant 0 : i32
    return %arg0, %c0_i32 : i32, i32
  }
  func.func @transform_1(%arg0: i32) -> (i32, i32) {
    %c0_i32 = arith.constant 0 : i32
    %c0_i32_0 = arith.constant 0 : i32
    %c0_i32_1 = arith.constant 0 : i32
    return %c0_i32, %c0_i32_0 : i32, i32
  }
  func.func @transform_2(%arg0: i32) -> (i32, i32) {
    %c0_i32 = arith.constant 0 : i32
    %c0_i32_0 = arith.constant 0 : i32
    %c0_i32_1 = arith.constant 0 : i32
    return %c0_i32, %c0_i32_0 : i32, i32
  }
  func.func @transform_3(%arg0: i32) -> (i32, i32) {
    %c0_i32 = arith.constant 0 : i32
    %c0_i32_0 = arith.constant 0 : i32
    return %arg0, %c0_i32 : i32, i32
  }
}

</mosaic_0001>

<bundles_post_ra>
// kernel: multimodal_projector.1
= control target key start
LH: loop header
LB: loop body
LE: loop exit
PB: predicated region body
PF: predicated region fallthrough
CT: control target
= control target key end

     0   :  { %8 = vsyncpa [#allocation3], 0  ;;  %s805_s0 = inlined_call_operand.hbm [shape: f32[32,32], index: 0, kind: input, shape index: {}]   ;;  %s806_s1 = inlined_call_operand.hbm [shape: bf16[32,128], index: 1, kind: input, shape index: {}]   ;;  %s807_s2 = inlined_call_operand.vmem [shape: f32[1,128], index: 2, kind: input, shape index: {}]   ;;  %s808_s3 = inlined_call_operand.hbm [shape: f32[32,128], index: 3, kind: output, shape index: {}]  }
   0x1   :  { %10 = vsyncpa [#allocation3 + $0x1], 0 }
   0x2   :  { %11 = vsyncpa [#allocation6], 0 }
   0x3   :  { %12 = vsyncpa [#allocation4], 0 }
   0x4   :  { %14 = vsyncpa [#allocation4 + $0x1], 0  ;;  %s615_s12 = smov 0   ;;  %s617_s13 = smov 0  }
   0x5   :  { %s619_s14 = smov 0   ;;  %s621_s15 = smov 0  }
   0x6 LB: > { %s636_s16 = sadd.s32 4294967295, %s586_s15   ;;  %s366_s17 = sadd.s32 4294967294, %s586_s15   ;;  %s586_s15 = sphi %s621_s15, %s827_s15   ;;  %s582_s14 = sphi %s619_s14, %s826_s14   ;;  %s578_s13 = sphi %s617_s13, %s825_s13   ;;  %s574_s12 = sphi %s615_s12, %s824_s12  }
   0x7   : > { %p40_p0 = scmp.ne.s32.totalorder %s578_s13, %s574_s12  ;;  %p809_p1 = scmp.eq.s32.totalorder %s636_s16, 0 }
   0x8   : > { %p112_p3 = scmp.eq.s32.totalorder %s366_s17, 3  ;;  %p367_p5 = scmp.ge.s32.totalorder %s586_s15, 1 }
   0x9   : > { %p645_p4 = por %p809_p1, %p40_p0  ;;  %p119_p7 = scmp.lt.s32.totalorder %s586_s15, 5 }
   0xa   : > { %p650_p6 = por %p112_p3, %p40_p0  ;;  %s588_s21 = smov [#allocation5]  }
   0xb   : > { %s812_s18 = scalar_select %p645_p4, 1, 0 }
   0xc   : > { %s813_s19 = scalar_select %p650_p6, 1, 0 }
   0xd   : > { %p655_p8 = pnand %p367_p5, %p119_p7  ;;  %s131_s22 = sshll.u32 %s588_s21, 4  ;;  %s132_s22 = int_to_ptr.vmem [resolvable:$true] %s131_s22 }
   0xe   : > { %s668_s24 = sadd.s32 1, %s586_s15   ;;  %s27_s25 = sadd.s32 1, %s582_s14 }
   0xf   : > { %s814_s20 = scalar_select %p655_p8, 1, 0 }
  0x10   : > { %p403_p9 = pneg %p655_p8  ;;  %s24_s26 = ssub.s32 %s586_s15, %s668_s24 }
  0x11   : > { %s458_s29 = scalar_lea.hbm %s806_s1, 256 }
  0x12   : > { %p663_p10 = pnand %p403_p9, %p809_p1  ;;  %p459_p11 = scmp.ne.s32.totalorder %s806_s1, %s458_s29 }
  0x13   : > { %p465_p3 = scmp.lt.u32.totalorder %s458_s29, %s806_s1 }
  0x14   : > { %p460_p12 = pneg %p663_p10 }
  0x16   : > { %p461_p13 = pnand %p460_p12, %p459_p11 }
  0x18   : > { %p462_p0 = pneg %p461_p13 }
  0x1a   : > { %p467_p5 = pnand %p465_p3, %p462_p0 }
  0x1c   : > { %470 = shalt.err (!%p467_p5)
}
  0x1d   : > { %s471_s7 = scalar_lea.vmem %s132_s22, 256  ;;  %p479_p2 = scmp.lt.s32.totalorder %s132_s22, %s132_s22 }
  0x1e   : > { %p472_p7 = scmp.ne.s32.totalorder %s132_s22, %s471_s7  ;;  %p480_p6 = scmp.lt.s32.totalorder %s471_s7, %s471_s7 }
  0x20   : > { %p474_p9 = pnand %p472_p7, %p460_p12  ;;  %p481_p4 = por %p480_p6, %p479_p2 }
  0x22   : > { %p475_p1 = pneg %p474_p9 }
  0x24   : > { %p482_p8 = pnand %p481_p4, %p475_p1 }
  0x26   : > { %485 = shalt.err (!%p482_p8)
}
  0x27   : > { %s589_s8 = smov 64   ;;  %s590_s9 = smov 4  }
  0x28   : > { %406 = dma.hbm_to_vmem [thread:$0]  (!%p663_p10), %s806_s1, 256, %s132_s22, [#allocation6], %s589_s8, %s589_s8, %s590_s9  }
  0x29   : > { %p25_p11 = scmp.eq.s32.totalorder %s24_s26, 0  ;;  %p34_p2 = scmp.ne.s32.totalorder %s582_s14, %s578_s13 }
  0x2a   : > { %p35_p1 = scmp.eq.s32.totalorder %s586_s15, 0  ;;  %p416_p4 = scmp.lt.s32.totalorder %s586_s15, 4 }
  0x2b   : > { %s694_s17 = scalar_select %p25_p11, %s582_s14, %s27_s25  }
  0x2c   : > { %p36_p6 = por %p35_p1, %p34_p2  ;;  %p816_p8 = scmp.eq.s32.totalorder %s636_s16, 3 }
  0x2d   : > { %s148_s27 = sand.u32 1, %s582_s14   ;;  %s371_s28 = sshll.u32 %s586_s15, 7 }
  0x2e   : > { %p698_p12 = por %p816_p8, %p34_p2  ;;  %s370_s29 = sshll.u32 %s148_s27, 3 }
  0x2f   : > { %s707_s4 = scalar_lea.hbm %s805_s0, %s371_s28  ;;  %s152_s22 = scalar_lea.vmem [#allocation2], %s370_s29 }
  0x30   : > { %s159_s25 = sshll.u32 %s152_s22, 4  ;;  %p709_p10 = pnand %p416_p4, %p36_p6  ;;  %s713_s25 = int_to_ptr.vmem [resolvable:$true] %s159_s25 }
  0x31   : > { %s149_s5 = scalar_lea.sflag [#allocation3], %s148_s27  ;;  %s486_s6 = scalar_lea.hbm %s707_s4, 128 }
  0x32   : > { %p487_p13 = scmp.ne.s32.totalorder %s707_s4, %s486_s6  ;;  %p488_p0 = pneg %p709_p10 }
  0x33   : > { %s491_s9 = scalar_lea.hbm %s805_s0, 512  ;;  %p492_p7 = scmp.lt.u32.totalorder %s707_s4, %s805_s0 }
  0x34   : > { %p489_p3 = pnand %p488_p0, %p487_p13  ;;  %p493_p9 = scmp.lt.u32.totalorder %s491_s9, %s486_s6 }
  0x35   : > { %p495_p2 = scmp.lt.u32.totalorder %s486_s6, %s707_s4 }
  0x36   : > { %p490_p5 = pneg %p489_p3  ;;  %p494_p11 = por %p493_p9, %p492_p7 }
  0x38   : > { %p496_p1 = por %p495_p2, %p494_p11 }
  0x3a   : > { %p497_p4 = pnand %p496_p1, %p490_p5 }
  0x3c   : > { %500 = shalt.err (!%p497_p4)
}
  0x3d   : > { %s501_s27 = scalar_lea.vmem %s713_s25, 128  ;;  %s591_s28 = smov [#allocation2]  }
  0x3e   : > { %p502_p6 = scmp.ne.s32.totalorder %s713_s25, %s501_s27  ;;  %s506_s29 = sshll.u32 %s591_s28, 4  ;;  %s507_s29 = int_to_ptr.vmem [resolvable:$false] %s506_s29 }
  0x3f   : > { %s508_s23 = scalar_lea.vmem %s507_s29, 256  ;;  %p509_p3 = scmp.lt.s32.totalorder %s713_s25, %s507_s29 }
  0x40   : > { %p504_p8 = pnand %p502_p6, %p488_p0  ;;  %p510_p7 = scmp.lt.s32.totalorder %s508_s23, %s501_s27 }
  0x42   : > { %p505_p13 = pneg %p504_p8  ;;  %p511_p9 = por %p510_p7, %p509_p3 }
  0x44   : > { %p512_p11 = pnand %p511_p9, %p505_p13 }
  0x46   : > { %515 = shalt.err (!%p512_p11)
}
  0x47   : > { %410 = dma.hbm_to_vmem [thread:$0]  (!%p709_p10), %s707_s4, 128, %s713_s25, %s149_s5  }
  0x48   : > { %p819_p5 = scmp.ne.s32.totalorder %s814_s20, 0 }
  0x49   : > { %s743_s30 = sand.u32 (!%p819_p5), 1, %s578_s13   ;;  %p820_p0 = scmp.ne.s32.totalorder (!%p819_p5), %s812_s18, 0 }
  0x4a   : > { %168 = sbr.rel (%p819_p5) target bundleno = 322 (0x142), region = 32  ;;  %s373_s22 = sshll.u32 (!%p819_p5), %s743_s30, 3 }
  0x4b   : > { %s171_s6 = scalar_lea.sflag (!%p819_p5), [#allocation3], %s743_s30  ;;  %s174_s7 = scalar_lea.vmem (!%p819_p5), [#allocation2], %s373_s22 }
  0x51   : > { %561 = dma.done.wait (%p820_p0), %s171_s6, 128  }
  0x52   : > { %563 = vsyncadd (%p820_p0), %s171_s6, 4294967168  ;;  %p821_p2 = scmp.eq.s32.totalorder %s636_s16, 0 }
  0x54   : > { %565 = dma.done.wait (%p821_p2), [#allocation6], 256   ;;  %p822_p10 = pmov %p821_p2 }
  0x55   : > { %v592_v0 = vmov 0.0   ;;  %vm593_vm0 = vmmov 0   ;;  %v456_v1 = vld [vmem:[#allocation5] sm:$0xff]   ;;  %v457_v2 = vld [vmem:[#allocation5 + $0x8] sm:$0xff]   ;;  %v202_v3 = vld [vmem:[%s174_s7] sm:$0xff]  ;;  %vm227_vm1 = vcmask 261120  }
  0x56   : > { %567 = vsyncadd (%p822_p10), [#allocation6], 4294967040  ;;  %387 = vmatprep.subr.bf16.mxu0 %v592_v0  ;;  %391 = vmatprep.mubr.msk.bf16.mxu0 %vm593_vm0, %v592_v0  ;;  %v203_v4 = vpack.c.bf16 %v202_v3, %v202_v3  ;;  %v376_v5 = vld [vmem:[%s807_s2] ss:$0 sm:$0xff]  ;;  %s381_s4 = sshll.u32 %s636_s16, 7  ;;  %s200_s25 = scalar_lea.vmem [#allocation7], %s373_s22 }
  0x57   : > { %388 = vmatpush3.bf16.msra.mxu0 %v456_v1  ;;  %s286_s26 = sshll.u32 %s200_s25, 4  ;;  %s762_s9 = scalar_lea.hbm %s808_s3, %s381_s4  ;;  %s764_s26 = int_to_ptr.vmem [resolvable:$true] %s286_s26 }
  0x58   : > { %389 = vmatprep.subr.bf16.mxu0 %v592_v0  ;;  %s273_s10 = scalar_lea.sflag [#allocation4], %s743_s30  ;;  %s516_s16 = scalar_lea.vmem %s764_s26, 128 }
  0x59   : > { %p517_p1 = scmp.ne.s32.totalorder %s764_s26, %s516_s16  ;;  %s594_s11 = smov [#allocation7]  }
  0x5a   : > { %s520_s27 = sshll.u32 %s594_s11, 4  ;;  %s521_s27 = int_to_ptr.vmem [resolvable:$false] %s520_s27 }
  0x5b   : > { %390 = vmatpush3.bf16.msra.mxu0 %v457_v2  ;;  %p518_p4 = pnand %p517_p1, %p698_p12  ;;  %s522_s28 = scalar_lea.vmem %s521_s27, 256 }
  0x5c   : > { %p523_p8 = scmp.lt.s32.totalorder %s764_s26, %s521_s27  ;;  %p524_p13 = scmp.lt.s32.totalorder %s522_s28, %s516_s16 }
  0x5d   : > { %p519_p6 = pneg %p518_p4 }
  0x5e   : > { %392 = vmatmul.mubr.msk.bf16.vlgmr.msra.gmra.mrb[0].mxu0 %vm227_vm1, %v203_v4  ;;  %p525_p3 = por %p524_p13, %p523_p8 }
  0x60   : > { %p526_p7 = pnand %p525_p3, %p519_p6 }
 0x131   : > { %v265_v6 = vpop.f32.mrb[0].mxu0 }
 0x132   : > { %v266_v7 = vadd.f32 %v376_v5, %v265_v6  ;;  %v393_v8 = vpop.f32.mrb[1].mxu0 }
 0x133   : > { %v268_v9 = vpop.f32.mrb[2].mxu0 }
 0x134   : > { %271 = vst [vmem:[%s200_s25] sm:$0xff] %v266_v7  ;;  %v394_v10 = vpop.f32.mrb[3].mxu0 }
 0x135   : > { %529 = shalt.err (!%p526_p7)
}
 0x136   : > { %s530_s29 = scalar_lea.hbm %s762_s9, 128  ;;  %s534_s22 = scalar_lea.hbm %s808_s3, 512 }
 0x137   : > { %p531_p9 = scmp.ne.s32.totalorder %s762_s9, %s530_s29  ;;  %p535_p0 = scmp.lt.u32.totalorder %s762_s9, %s808_s3 }
 0x138   : > { %p536_p2 = scmp.lt.u32.totalorder %s534_s22, %s530_s29  ;;  %p538_p1 = scmp.lt.u32.totalorder %s530_s29, %s762_s9 }
 0x139   : > { %p532_p11 = pnand %p531_p9, %p698_p12 }
 0x13a   : > { %p537_p10 = por %p536_p2, %p535_p0 }
 0x13b   : > { %p533_p5 = pneg %p532_p11 }
 0x13c   : > { %p539_p4 = por %p538_p1, %p537_p10 }
 0x13e   : > { %p540_p6 = pnand %p539_p4, %p533_p5 }
 0x140   : > { %543 = shalt.err (!%p540_p6)
}
 0x141   : > { %401 = dma.vmem_to_hbm [thread:$0]  (%p698_p12), %s764_s26, 128, %s762_s9, %s273_s10  }
 0x142 PF: > { %p418_p8 = scmp.ge.s32.totalorder %s586_s15, 2  ;;  %s298_s18 = sand.u32 1, %s574_s12  }
 0x143   : > { %p823_p13 = scmp.ne.s32.totalorder %s813_s19, 0  ;;  %s299_s20 = scalar_lea.sflag [#allocation4], %s298_s18 }
 0x145   : > { %p412_p3 = pnand %p418_p8, %p823_p13 }
 0x147   : > { %569 = dma.done.wait (!%p412_p3), %s299_s20, 128  }
 0x148   : > { %571 = vsyncadd (!%p412_p3), %s299_s20, 4294967168  ;;  %p17_p7 = scmp.ge.s32.totalorder %s668_s24, 6   ;;  %s824_s12 = smov %s578_s13 }
 0x149   : > { %s825_s13 = smov %s582_s14  ;;  %s826_s14 = smov %s694_s17 }
 0x14a   : > { %s827_s15 = smov %s668_s24  ;;  %19 = sbr.rel (!%p17_p7) target bundleno = 6 (0x6), region = 81 }
 0x151   :  { %304 = vsyncpa [#allocation3], 1 }
 0x152   :  { %306 = vsyncpa [#allocation3 + $0x1], 1 }
 0x153   :  { %307 = vsyncpa [#allocation6], 1 }
 0x154   :  { %308 = vsyncpa [#allocation4], 1 }
 0x155   :  { %310 = vsyncpa [#allocation4 + $0x1], 1 }

</bundles_post_ra>
